<compile_context>
chip_gen: v7x
topology: tpu7x:2x2x1
jax: 0.10.0
libtpu: 0.0.40
codegen_flags: <defaults>
</compile_context>

<pallas_src>
import jax
import jax.numpy as jnp
from jax.experimental import pallas as pl
from jax.experimental.pallas import tpu as pltpu


# ----------------------------------------------------------------------------
# Kernel
# ----------------------------------------------------------------------------
def _value_kernel(x_ref, w_ref, b_ref, o_ref):
    # x_ref: (TB, D)   VMEM  -- batch tile (batch on sublanes, D on lanes)
    # w_ref: (num, D)  VMEM  -- resident across the grid
    # b_ref: (num, 1)  VMEM  -- bias column (f32)
    # o_ref: (num, TB) VMEM  -- lane-dense output (batch on lanes)
    y = jax.lax.dot_general(
        w_ref[...], x_ref[...],
        dimension_numbers=(((1,), (1,)), ((), ())),   # contract D against D
        preferred_element_type=jnp.float32,
    )  # (num, TB), f32 accumulation on the MXU
    o_ref[...] = (y + b_ref[...]).astype(o_ref.dtype)  # one vectorized store


# ----------------------------------------------------------------------------
# Wrapper helpers
# ----------------------------------------------------------------------------
def _round_up(n, m):
    return ((n + m - 1) // m) * m


def _physical_vmem_bytes():
    """Best-effort query of per-core VMEM capacity (fallback: 128 MiB)."""
    try:
        info = pltpu.get_tpu_info()
        cap = getattr(info, "vmem_capacity_bytes", None)
        if cap:
            return int(cap)
    except Exception:
        pass
    return 128 * 1024 * 1024


def _vmem_needed(tb, d, num, in_bytes, out_bytes):
    """Estimated VMEM footprint for one pipelined grid step (double-buffered)."""
    x_buf = 2 * tb * d * in_bytes          # double-buffered x tile
    o_buf = 2 * num * tb * out_bytes       # double-buffered output tile
    w_buf = 2 * num * d * in_bytes         # resident W (conservatively x2)
    b_buf = 2 * num * 4                    # bias column (f32)
    return x_buf + o_buf + w_buf + b_buf


# ----------------------------------------------------------------------------
# Forward
# ----------------------------------------------------------------------------
def value_net_forward(x, weight, bias, *, target_tile_bytes=4 * 1024 * 1024):
    """Pallas forward of ValueNet: x [B, D] -> value [B, num]."""
    B, D = x.shape
    num, D2 = weight.shape
    assert D == D2
    assert bias.shape == (num,)

    in_bytes = jnp.dtype(x.dtype).itemsize
    out_bytes = in_bytes
    vmem_cap = _physical_vmem_bytes()

    # --- batch tile sized by bytes (mem-bound kernel: big tiles amortize the
    # ~0.35 us per-grid-step overhead), rounded down to a multiple of 128 ----
    tb = max(128, (target_tile_bytes // max(1, D * in_bytes)) // 128 * 128)
    b_pad_min = _round_up(B, 128)
    tb = min(tb, b_pad_min)

    # --- v7x (64 MiB VMEM, 2 TensorCores): keep >=2 grid steps so the
    # "parallel" batch axis actually feeds both cores -------------------------
    if vmem_cap <= 64 * 1024 * 1024 and b_pad_min >= 256:
        tb = min(tb, _round_up(pl.cdiv(b_pad_min, 2), 128))

    # --- shrink until the double-buffered footprint fits the chip's VMEM -----
    budget_cap = int(vmem_cap * 0.75)
    while tb > 128 and _vmem_needed(tb, D, num, in_bytes, out_bytes) > budget_cap:
        tb -= 128

    # --- pad B so every block is full (no masked edge stores) ----------------
    B_pad = _round_up(B, tb)
    if B_pad != B:
        x = jnp.pad(x, ((0, B_pad - B), (0, 0)))
    grid_b = B_pad // tb

    # --- VMEM limit derived from the tile budget (not a fixed 32 MiB) --------
    needed = _vmem_needed(tb, D, num, in_bytes, out_bytes)
    vmem_limit = min(int(vmem_cap * 0.78),
                     max(needed + (4 << 20), 32 << 20))

    weight = weight.astype(x.dtype)                       # bf16-friendly
    bias_col = bias.reshape(num, 1).astype(jnp.float32)   # added in f32

    out_t = pl.pallas_call(
        _value_kernel,
        out_shape=jax.ShapeDtypeStruct((num, B_pad), x.dtype),
        grid=(grid_b,),
        in_specs=[
            pl.BlockSpec((tb, D), lambda i: (i, 0)),    # x batch tile
            pl.BlockSpec((num, D), lambda i: (0, 0)),   # W stays resident
            pl.BlockSpec((num, 1), lambda i: (0, 0)),   # bias column
        ],
        out_specs=pl.BlockSpec((num, tb), lambda i: (0, i)),   # lane-dense
        compiler_params=pltpu.CompilerParams(
            dimension_semantics=("parallel",),   # 2x on v7x megacore
            vmem_limit_bytes=vmem_limit,
        ),
        cost_estimate=pl.CostEstimate(
            flops=2 * B_pad * D * num,
            transcendentals=0,
            bytes_accessed=(in_bytes * (B_pad * D + num * D)
                            + out_bytes * (B_pad * num)
                            + 4 * num),
        ),
    )(x, weight, bias_col)

    out_t = out_t[:, :B]
    if num == 1:
        return out_t.reshape(B, 1)   # avoid any chance of a transpose copy
    return out_t.T


# ----------------------------------------------------------------------------
# Parameter init matching the PyTorch module (norm_col_init, zero bias)
# ----------------------------------------------------------------------------
def norm_col_init(key, shape, std=0.1):
    """randn scaled so each row has L2 norm == std (sum over dim=1, keepdim)."""
    x = jax.random.normal(key, shape, dtype=jnp.float32)
    x = x * (std / jnp.sqrt(jnp.sum(x * x, axis=1, keepdims=True)))
    return x


if __name__ == "__main__":
    key = jax.random.PRNGKey(0)
    k_x, k_w = jax.random.split(key)

    B = 256          # batch (exercises a multi-step lane-dense grid)
    input_dim = 64   # feature dim
    num = 1          # value head outputs (default num=1)

    x = jax.random.normal(k_x, (B, input_dim), dtype=jnp.float32)
    weight = norm_col_init(k_w, (num, input_dim), std=0.1)   # [num, input_dim]
    bias = jnp.zeros((num,), dtype=jnp.float32)

    value = value_net_forward(x, weight, bias)
    value = jax.block_until_ready(value)

    # Sanity check against plain-JAX reference.
    ref = x @ weight.T + bias[None, :]
    assert value.shape == (B, num)
    assert jnp.allclose(value, ref, atol=1e-5, rtol=1e-5)

    print("KERNEL_OK")
</pallas_src>

<mosaic_0001>
module attributes {stable_mosaic.version = 11 : i64} {
  func.func @_value_kernel(%arg0: i32, %arg1: memref<256x64xf32, #tpu.memory_space<vmem>>, %arg2: memref<1x64xf32, #tpu.memory_space<vmem>>, %arg3: memref<1x1xf32, #tpu.memory_space<vmem>>, %arg4: memref<1x256xf32, #tpu.memory_space<vmem>>) attributes {dimension_semantics = [#tpu.dimension_semantics<parallel>], iteration_bounds = array<i64: 1>, scalar_prefetch = 0 : i64, scratch_operands = 0 : i64, tpu.core_type = #tpu.core_type<tc>, window_params = [{transform_indices = @transform_0, window_bounds = array<i64: 256, 64>}, {pipeline_mode = #tpu.pipeline_mode<synchronous>, transform_indices = @transform_1, window_bounds = array<i64: 1, 64>}, {pipeline_mode = #tpu.pipeline_mode<synchronous>, transform_indices = @transform_2, window_bounds = array<i64: 1, 1>}, {transform_indices = @transform_3, window_bounds = array<i64: 1, 256>}]} {
    %c0 = arith.constant 0 : index
    %c0_0 = arith.constant 0 : index
    %0 = vector.load %arg2[%c0, %c0_0] : memref<1x64xf32, #tpu.memory_space<vmem>>, vector<1x64xf32>
    %c0_1 = arith.constant 0 : index
    %c0_2 = arith.constant 0 : index
    %1 = vector.load %arg1[%c0_1, %c0_2] : memref<256x64xf32, #tpu.memory_space<vmem>>, vector<256x64xf32>
    %cst = arith.constant dense<0.000000e+00> : vector<1x256xf32>
    %2 = tpu.matmul %0, %1, %cst {dimension_numbers = #tpu.dot_dimension_numbers<[1], [1], [0], [0], [0, 0, 1, 0], [], []>} : vector<1x64xf32>, vector<256x64xf32>, vector<1x256xf32> -> vector<1x256xf32>
    %c0_3 = arith.constant 0 : index
    %c0_4 = arith.constant 0 : index
    %3 = vector.load %arg3[%c0_3, %c0_4] : memref<1x1xf32, #tpu.memory_space<vmem>>, vector<1x1xf32>
    %4 = vector.broadcast %3 : vector<1x1xf32> to vector<1x256xf32>
    %5 = arith.addf %2, %4 : vector<1x256xf32>
    %c0_5 = arith.constant 0 : index
    %c0_6 = arith.constant 0 : index
    %6 = vector.load %arg4[%c0_5, %c0_6] : memref<1x256xf32, #tpu.memory_space<vmem>>, vector<1x256xf32>
    tpu.vector_store %arg4[%c0_5, %c0_6], %5 {strides = array<i32>} : memref<1x256xf32, #tpu.memory_space<vmem>>, vector<1x256xf32>,
    return
  }
  func.func @transform_0(%arg0: i32) -> (i32, i32) {
    %c0_i32 = arith.constant 0 : i32
    %c0_i32_0 = arith.constant 0 : i32
    return %arg0, %c0_i32 : i32, i32
  }
  func.func @transform_1(%arg0: i32) -> (i32, i32) {
    %c0_i32 = arith.constant 0 : i32
    %c0_i32_0 = arith.constant 0 : i32
    %c0_i32_1 = arith.constant 0 : i32
    return %c0_i32, %c0_i32_0 : i32, i32
  }
  func.func @transform_2(%arg0: i32) -> (i32, i32) {
    %c0_i32 = arith.constant 0 : i32
    %c0_i32_0 = arith.constant 0 : i32
    %c0_i32_1 = arith.constant 0 : i32
    return %c0_i32, %c0_i32_0 : i32, i32
  }
  func.func @transform_3(%arg0: i32) -> (i32, i32) {
    %c0_i32 = arith.constant 0 : i32
    %c0_i32_0 = arith.constant 0 : i32
    return %c0_i32, %arg0 : i32, i32
  }
}

</mosaic_0001>

<bundles_post_ra>
// kernel: tpu_custom_call.1
= control target key start
LH: loop header
LB: loop body
LE: loop exit
PB: predicated region body
PF: predicated region fallthrough
CT: control target
= control target key end

     0   :  { %s588_s0 = inlined_call_operand.vmem [shape: f32[256,64], index: 0, kind: input, shape index: {}]   ;;  %s589_s1 = inlined_call_operand.vmem [shape: f32[1,64], index: 1, kind: input, shape index: {}]   ;;  %s590_s2 = inlined_call_operand.<no memory space> [shape: f32[1,1], index: 2, kind: input, shape index: {}]   ;;  %s591_s3 = inlined_call_operand.hbm [shape: f32[1,256], index: 3, kind: output, shape index: {}]  }
   0x1   :  { %v8_v0 = vstv %s590_s2 }
   0x2   :  { %9 = vst [vmem:[#allocation2] sm:$0x1] %v8_v0 }
   0x3   :  { %v34_v1 = vld [vmem:[%s588_s0 + $0x80] sm:$0xff]  ;;  %v35_v2 = vld [vmem:[%s588_s0 + $0x88] sm:$0xff]  ;;  %vm60_vm0 = vcmask 523264   ;;  %v36_v7 = vld [vmem:[%s588_s0 + $0x90] sm:$0xff]  ;;  %v411_v8 = vmov 0  }
   0x4   :  { %v18_v3 = vld [vmem:[%s588_s0] sm:$0xff]  ;;  %v335_v4 = vpack.c.bf16 %v35_v2, %v34_v1  ;;  %vm448_vm1 = vmpackc.low %vm60_vm0, %vm60_vm0  ;;  %v19_v6 = vld [vmem:[%s588_s0 + $0x8] sm:$0xff]  ;;  %386 = vset.pattern.permute.xlu0 %v411_v8 }
   0x5   :  { %v338_v9 = vpack.c.bf16 %v19_v6, %v18_v3  ;;  %v37_v10 = vld [vmem:[%s588_s0 + $0x98] sm:$0xff]  ;;  %v20_v12 = vld [vmem:[%s588_s0 + $0x10] sm:$0xff]  ;;  %v38_v14 = vld [vmem:[%s588_s0 + $0xa0] sm:$0xff] }
   0x6   :  { %337 = vmatprep.subr.msk.bf16.mxu0 %vm448_vm1, %v335_v4  ;;  %v341_v11 = vpack.c.bf16 %v37_v10, %v36_v7  ;;  %v21_v13 = vld [vmem:[%s588_s0 + $0x18] sm:$0xff]  ;;  %v39_v15 = vld [vmem:[%s588_s0 + $0xa8] sm:$0xff]  ;;  %v17_v18 = vld [vmem:[%s589_s1] sm:$0x1] }
   0x7   :  { %340 = vmatpush3.bf16.xpose.msk.msra.mxu0 %vm448_vm1, %v338_v9  ;;  %v344_v16 = vpack.c.bf16 %v21_v13, %v20_v12  ;;  %v347_v17 = vpack.c.bf16 %v39_v15, %v38_v14 }
   0x8   :  { %343 = vmatprep.subr.msk.bf16.mxu0 %vm448_vm1, %v341_v11 }
   0x9   :  { %v50_v19 = vld [vmem:[#allocation2] sm:$0x1] }
   0xa   :  { %10 = vsyncpa [#allocation4], 0  ;;  %333 = vmatprep.mubr.msk.f32.mxu0 %vm60_vm0, %v17_v18  ;;  %v22_v20 = vld [vmem:[%s588_s0 + $0x20] sm:$0xff]  ;;  %v23_v21 = vld [vmem:[%s588_s0 + $0x28] sm:$0xff]  ;;  %53 = vperm.xlu0 %386, %v50_v19   ;;  %v56_v53 = vlaneseq  ;;  %v412_v57 = vmov 1966171168  }
   0xb   :  { %v40_v22 = vld [vmem:[%s588_s0 + $0xb0] sm:$0xff]  ;;  %v41_v23 = vld [vmem:[%s588_s0 + $0xb8] sm:$0xff]  ;;  %v350_v24 = vpack.c.bf16 %v23_v21, %v22_v20  ;;  %v42_v28 = vld [vmem:[%s588_s0 + $0xc0] sm:$0xff]  ;;  %v235_v58 = vunpack.c.l.s4 %v412_v57 }
   0xc   :  { %v353_v25 = vpack.c.bf16 %v41_v23, %v40_v22  ;;  %v24_v26 = vld [vmem:[%s588_s0 + $0x30] sm:$0xff]  ;;  %v25_v27 = vld [vmem:[%s588_s0 + $0x38] sm:$0xff]  ;;  %v43_v29 = vld [vmem:[%s588_s0 + $0xc8] sm:$0xff]  ;;  %v57_v54 = vshrl.u32 %v56_v53, 7  ;;  %vm251_vm2 = vcmp.lt.s32.totalorder %v56_v53, 256 }
   0xd   :  { %v356_v30 = vpack.c.bf16 %v25_v27, %v24_v26  ;;  %v359_v31 = vpack.c.bf16 %v43_v29, %v42_v28  ;;  %v26_v32 = vld [vmem:[%s588_s0 + $0x40] sm:$0xff]  ;;  %v27_v33 = vld [vmem:[%s588_s0 + $0x48] sm:$0xff]  ;;  %v44_v34 = vld [vmem:[%s588_s0 + $0xd0] sm:$0xff]  ;;  %v236_v60 = vunpack.c.0.s8 %v235_v58 }
   0xe   :  { %v45_v35 = vld [vmem:[%s588_s0 + $0xd8] sm:$0xff]  ;;  %v362_v36 = vpack.c.bf16 %v27_v33, %v26_v32  ;;  %v28_v38 = vld [vmem:[%s588_s0 + $0x50] sm:$0xff]  ;;  %v46_v40 = vld [vmem:[%s588_s0 + $0xe0] sm:$0xff]  ;;  %v58_v55 = vsub.s32 0, %v57_v54 }
   0xf   :  { %346 = vmatpush3.bf16.xpose.msk.msra.mxu0 %vm448_vm1, %v344_v16  ;;  %v365_v37 = vpack.c.bf16 %v45_v35, %v44_v34  ;;  %v29_v39 = vld [vmem:[%s588_s0 + $0x58] sm:$0xff]  ;;  %v47_v41 = vld [vmem:[%s588_s0 + $0xe8] sm:$0xff]  ;;  %v30_v44 = vld [vmem:[%s588_s0 + $0x60] sm:$0xff]  ;;  %v239_v1 = vsub.s32 %v236_v60, %v57_v54 }
  0x10   :  { %349 = vmatprep.subr.msk.bf16.mxu0 %vm448_vm1, %v347_v17  ;;  %v368_v42 = vpack.c.bf16 %v29_v39, %v28_v38  ;;  %v371_v43 = vpack.c.bf16 %v47_v41, %v46_v40  ;;  %v31_v45 = vld [vmem:[%s588_s0 + $0x68] sm:$0xff]  ;;  %v48_v46 = vld [vmem:[%s588_s0 + $0xf0] sm:$0xff]  ;;  %v49_v47 = vld [vmem:[%s588_s0 + $0xf8] sm:$0xff] }
  0x11   :  { %v374_v48 = vpack.c.bf16 %v31_v45, %v30_v44  ;;  %v377_v49 = vpack.c.bf16 %v49_v47, %v48_v46  ;;  %v32_v50 = vld [vmem:[%s588_s0 + $0x70] sm:$0xff]  ;;  %v33_v51 = vld [vmem:[%s588_s0 + $0x78] sm:$0xff]  ;;  %s413_s0 = smov [#allocation3]  }
  0x12   :  { %v380_v52 = vpack.c.bf16 %v33_v51, %v32_v50  ;;  %s260_s21 = sshll.u32 %s413_s0, 4  ;;  %s261_s21 = int_to_ptr.vmem [resolvable:$true] %s260_s21 }
  0x13   :  { %s387_s22 = scalar_lea.vmem %s261_s21, 32  ;;  %p392_p1 = scmp.lt.s32.totalorder %s261_s21, %s261_s21 }
  0x14   :  { %p388_p0 = scmp.ne.s32.totalorder %s261_s21, %s387_s22  ;;  %p393_p2 = scmp.lt.s32.totalorder %s387_s22, %s387_s22 }
  0x16   :  { %p394_p3 = por %p393_p2, %p392_p1 }
  0x17   :  { %352 = vmatpush3.bf16.xpose.msk.msra.mxu0 %vm448_vm1, %v350_v24 }
  0x18   :  { %355 = vmatprep.subr.msk.bf16.mxu0 %vm448_vm1, %v353_v25  ;;  %p395_p4 = pnand %p394_p3, %p388_p0 }
  0x1f   :  { %358 = vmatpush3.bf16.xpose.msk.msra.mxu0 %vm448_vm1, %v356_v30 }
  0x20   :  { %361 = vmatprep.subr.msk.bf16.mxu0 %vm448_vm1, %v359_v31 }
  0x27   :  { %364 = vmatpush3.bf16.xpose.msk.msra.mxu0 %vm448_vm1, %v362_v36 }
  0x28   :  { %367 = vmatprep.subr.msk.bf16.mxu0 %vm448_vm1, %v365_v37 }
  0x2f   :  { %370 = vmatpush3.bf16.xpose.msk.msra.mxu0 %vm448_vm1, %v368_v42 }
  0x30   :  { %373 = vmatprep.subr.msk.bf16.mxu0 %vm448_vm1, %v371_v43 }
  0x37   :  { %376 = vmatpush3.bf16.xpose.msk.msra.mxu0 %vm448_vm1, %v374_v48 }
  0x38   :  { %379 = vmatprep.subr.msk.bf16.mxu0 %vm448_vm1, %v377_v49 }
  0x3f   :  { %382 = vmatpush3.bf16.xpose.msk.msra.mxu0 %vm448_vm1, %v380_v52 }
  0x46   :  { %334 = vmatmul.mubr.msk.f32.vlgmr.msra.gmra.mrb[0].mxu0 %vm60_vm0, %v17_v18 }
  0x89   :  { %v54_v56 = vpop.permute.xlu0 %53 }
  0x8a   :  { %v59_v59 = vrot.slane %v54_v56, %v58_v55 }
 0x119   :  { %v226_v61 = vpop.f32.mrb[0].mxu0 }
 0x11a   :  { %v227_v62 = vadd.f32 %v226_v61, %v59_v59  ;;  %v228_v63 = vpop.f32.mrb[1].mxu0 }
 0x11b   :  { %v229_v0 = vadd.f32 %v228_v63, %v59_v59 }
 0x11d   :  { %v233_v2 = vcombine.low %v227_v62, %v229_v0 }
 0x11f   :  { %v240_v3 = vrot.slane %v233_v2, %v239_v1 }
 0x121   :  { %v247_v4 = vrot.slane %v240_v3, %v239_v1 }
 0x123   :  { %253 = vst.msk [vmem:[#allocation3] sm:$0x3] %vm251_vm2, %v247_v4 }
 0x124   :  { %398 = shalt.err (!%p395_p4)
}
 0x125   :  { %s399_s25 = scalar_lea.hbm %s591_s3, 32 }
 0x126   :  { %p400_p5 = scmp.ne.s32.totalorder %s591_s3, %s399_s25  ;;  %p403_p6 = scmp.lt.u32.totalorder %s399_s25, %s591_s3 }
 0x128   :  { %p405_p7 = pnand %p403_p6, %p400_p5 }
 0x12a   :  { %408 = shalt.err (!%p405_p7)
}
 0x12b   :  { %263 = dma.vmem_to_hbm [thread:$0]  %s261_s21, 32, %s591_s3, [#allocation4]  }
 0x12c   :  { %409 = dma.done.wait [#allocation4], 32  }
 0x12d   :  { %410 = vsyncadd [#allocation4], 4294967264 }
 0x12e   :  { %267 = vsyncpa [#allocation4], 1 }

</bundles_post_ra>
